<compile_context>
chip_gen: v7x
topology: tpu7x:2x2x1
jax: 0.10.0
libtpu: 0.0.40
codegen_flags: <defaults>
</compile_context>

<pallas_src>
import math
import numpy as np

import jax
import jax.numpy as jnp
from jax.experimental import pallas as pl
from jax.experimental.pallas import tpu as pltpu


def _round_up(x, m):
    return ((x + m - 1) // m) * m


def _ceil_div(a, b):
    return -(-a // b)


# --------------------------------------------------------------------------- #
# Fused kernel: all conv+relu layers of the Head for one batch tile.
# --------------------------------------------------------------------------- #
def _make_fused_head_kernel(layer_dims, use_mxu, stride, pad, K, TB, mxu_bf16):
    """layer_dims: list of (Cin, Cout, L_in, L_out, R_in) per conv layer.

    Activation layout everywhere is batch-on-lanes space-to-depth:
        buf[r, phase*C + c, n] == activation[n, c, r*stride + phase]   (padded coords)
    so every conv tap is a contiguous slice and every load/store is lane dense.
    """
    n_layers = len(layer_dims)
    s = stride
    G = _ceil_div(K, s)          # taps folded per row offset

    def kernel(*refs):
        x_ref = refs[0]
        w_refs = [refs[1 + 2 * l] for l in range(n_layers)]
        b_refs = [refs[2 + 2 * l] for l in range(n_layers)]
        o_ref = refs[1 + 2 * n_layers]
        scratch = list(refs[2 + 2 * n_layers:])

        # Halo zeroing: only the boundary rows of each s2d scratch buffer have to
        # read as zero; every data slot is fully overwritten later in this same
        # grid step, so zeroing whole boundary rows up-front is safe.  No
        # pl.when(program_id == 0) guard: with "parallel" semantics each core has
        # its own scratch and may never execute step 0.
        if pad > 0:
            for idx, buf in enumerate(scratch):
                Cin_n, _, L_in_n, _, R_n = layer_dims[idx + 1]
                lo = min(_ceil_div(pad, s), R_n)
                hi = min((pad + L_in_n) // s, R_n)
                if lo > 0:
                    buf[0:lo, :, :] = jnp.zeros((lo, s * Cin_n, TB), jnp.float32)
                if hi < R_n:
                    buf[hi:R_n, :, :] = jnp.zeros((R_n - hi, s * Cin_n, TB), jnp.float32)

        cur_ref = x_ref
        for l in range(n_layers):
            Cin, Cout, L_in, L_out, R_in = layer_dims[l]
            w_ref = w_refs[l]
            b_ref = b_refs[l]

            if use_mxu[l]:
                # Large channel counts: tap-grouped GEMMs on the MXU.
                # Operands: weights (G, s*Cin, Cout), bias (1, Cout).
                M = L_out * TB
                acc = jnp.zeros((M, Cout), jnp.float32)
                for g in range(G):
                    npg = min(s, K - g * s)                 # taps folded in group g
                    GC = npg * Cin
                    xg = cur_ref[g:g + L_out, 0:GC, :]                 # (L_out, GC, TB)
                    x2 = jnp.transpose(xg, (0, 2, 1)).reshape(M, GC)   # TB % 8 == 0
                    wg = w_ref[g, 0:GC, :]                             # (GC, Cout)
                    if mxu_bf16:
                        # bf16 MXU operands (f32 accumulation); small deviation from
                        # the f32 PyTorch reference is expected on this path.
                        x2 = x2.astype(jnp.bfloat16)
                        wg = wg.astype(jnp.bfloat16)
                    acc = acc + jnp.dot(x2, wg, preferred_element_type=jnp.float32)
                y2 = jnp.maximum(acc + b_ref[...], 0.0)                # (M, Cout)
                y3 = jnp.transpose(y2.reshape(L_out, TB, Cout), (0, 2, 1))
            else:
                # Small channel counts: 128-lane VPU broadcast-FMAs (the MXU would be
                # mostly padding).  Operands: weights (K, Cin, Cout, 1), bias (Cout, 1).
                acc = jnp.zeros((L_out, Cout, TB), jnp.float32)
                for k in range(K):
                    g, p = k // s, k % s
                    c0 = p * Cin
                    for ci in range(Cin):
                        x_slab = cur_ref[g:g + L_out, c0 + ci:c0 + ci + 1, :]  # (L_out,1,TB)
                        w_vec = w_ref[k, ci:ci + 1, :, :]                       # (1,Cout,1)
                        acc = acc + x_slab * w_vec
                y3 = jnp.maximum(acc + b_ref[...], 0.0)                         # (L_out,Cout,TB)

            if l == n_layers - 1:
                o_ref[...] = y3.astype(o_ref.dtype)        # single lane-dense store
            else:
                # Scatter this layer's output into the next layer's s2d buffer.
                nxt = scratch[l]
                j_start = (-pad) % s
                n_full = (L_out - j_start) // s if L_out > j_start else 0
                bulk_ok = (s == 1) or (Cout % 8 == 0)      # leading-dim-only reshape
                if bulk_ok and n_full > 0:
                    # s consecutive outputs form one complete s2d row -> one wide
                    # store per run of full rows.
                    r0 = (pad + j_start) // s
                    blk = y3[j_start:j_start + n_full * s]
                    nxt[r0:r0 + n_full, :, :] = blk.reshape(n_full, s * Cout, TB)
                    rows = list(range(0, j_start)) + \
                        list(range(j_start + n_full * s, L_out))
                else:
                    rows = list(range(L_out))
                for j in rows:                             # few head/tail rows only
                    t = pad + j
                    nxt[t // s, (t % s) * Cout:((t % s) + 1) * Cout, :] = y3[j]
                cur_ref = nxt

    return kernel


# --------------------------------------------------------------------------- #
# Wrapper: layout glue + pallas_call
# --------------------------------------------------------------------------- #
def head_forward_pallas(x, params, stride, pad, mxu_bf16=True):
    """x: (N, C0, L0) float32 (PyTorch NCL).  params: list of (w=(Cout,Cin,K), b=(Cout,))."""
    if pad < 0:
        raise ValueError("stride > kernel_size gives negative padding "
                         "(PyTorch Conv1d rejects this too)")
    s = int(stride)
    N, C0, L0 = (int(d) for d in x.shape)
    K = int(params[0][0].shape[2])

    # Static per-layer geometry.
    layer_dims = []
    L_in, C_in = L0, C0
    for (w, b) in params:
        Cout, Cin, Kw = (int(d) for d in w.shape)
        assert Cin == C_in and Kw == K
        L_padded = L_in + 2 * pad
        L_out = (L_padded - K) // s + 1
        assert L_out >= 1, "layer output length collapsed to zero"
        R_in = _ceil_div(L_padded, s)
        layer_dims.append((C_in, Cout, L_in, L_out, R_in))
        L_in, C_in = L_out, Cout
    L_f, C_f = L_in, C_in
    R0 = layer_dims[0][4]
    G = _ceil_div(K, s)
    n_layers = len(layer_dims)

    # ---- per-generation tuning knobs -------------------------------------- #
    try:
        kind = jax.devices()[0].device_kind.lower()
    except Exception:
        kind = ""
    if ("v5e" in kind) or ("v5 lite" in kind) or ("v5lite" in kind):
        tb_cap, vmem_budget, mxu_k_min = 256, 96 << 20, 64      # 128 MiB VMEM part
    elif ("v6" in kind) or ("trillium" in kind):
        tb_cap, vmem_budget, mxu_k_min = 256, 96 << 20, 128     # 128 MiB VMEM part
    else:                                                        # v7x / unknown: 64 MiB per core
        tb_cap, vmem_budget, mxu_k_min = 128, 28 << 20, 128

    # MXU only where the folded contraction and output width are big enough;
    # otherwise the lane-dense VPU path wins (tiny channels are >90% MXU padding).
    use_mxu = [(s * Cin >= mxu_k_min and Cout >= 64)
               for (Cin, Cout, _, _, _) in layer_dims]

    # ---- batch tiling (TB is the lane dimension) --------------------------- #
    # TB is either the whole (8-padded) batch, or a multiple of 128 when the batch
    # axis is split across the grid (Mosaic lane-tiling rule).
    N8 = _round_up(max(N, 1), 8)
    TB = N8 if N8 <= tb_cap else tb_cap

    def _vmem_need(tb):
        lanes = _round_up(tb, 128)
        in_blk = R0 * _round_up(s * C0, 8) * lanes * 4
        out_blk = L_f * _round_up(C_f, 8) * lanes * 4
        scr = sum(layer_dims[l][4] * _round_up(s * layer_dims[l][0], 8) * lanes * 4
                  for l in range(1, n_layers))
        wgt = 0
        for (Cin, Cout, _, _, _), mxu in zip(layer_dims, use_mxu):
            if mxu:
                wgt += G * _round_up(s * Cin, 8) * _round_up(Cout, 128) * 4
                wgt += 8 * _round_up(Cout, 128) * 4
            else:
                wgt += K * Cin * _round_up(Cout, 8) * 128 * 4
                wgt += _round_up(Cout, 8) * 128 * 4
        return 2 * (in_blk + out_blk) + 2 * wgt + scr + (4 << 20)

    while _vmem_need(TB) > vmem_budget and TB > 128:
        TB = max(128, (TB - 1) // 128 * 128)
    N_pad = _round_up(N, TB)
    grid = (N_pad // TB,)
    # TODO(synk): on v7x a single grid step leaves one TensorCore idle; batches
    # <= 128 cannot be split further without violating the 128-lane tiling rule.

    # ---- layer-0 input in batch-on-lanes space-to-depth layout ------------- #
    #   x_s2d[r, p*C0 + c, n] == x_padded[n, c, r*s + p]
    x_p = jnp.pad(x.astype(jnp.float32),
                  ((0, N_pad - N), (0, 0), (pad, R0 * s - L0 - pad)))
    x_s2d = x_p.transpose(2, 1, 0).reshape(R0, s * C0, N_pad)

    # ---- kernel operands ---------------------------------------------------- #
    flat_inputs = [x_s2d]
    in_specs = [pl.BlockSpec((R0, s * C0, TB), lambda i: (0, 0, i))]
    for (w, b), (Cin, Cout, _, _, _), mxu in zip(params, layer_dims, use_mxu):
        wk = jnp.transpose(w, (2, 1, 0)).astype(jnp.float32)          # (K, Cin, Cout)
        if mxu:
            # Tap-grouped weights: wg[g, p*Cin+ci, co] = w[co, ci, g*s+p]
            wg = jnp.pad(wk, ((0, G * s - K), (0, 0), (0, 0))).reshape(G, s * Cin, Cout)
            flat_inputs += [wg, b.astype(jnp.float32).reshape(1, Cout)]
            in_specs += [pl.BlockSpec((G, s * Cin, Cout), lambda i: (0, 0, 0)),
                         pl.BlockSpec((1, Cout), lambda i: (0, 0))]
        else:
            # (K, Cin, Cout, 1): Cout on sublanes so the in-kernel splat is lane-wise.
            flat_inputs += [wk[..., None], b.astype(jnp.float32).reshape(Cout, 1)]
            in_specs += [pl.BlockSpec((K, Cin, Cout, 1), lambda i: (0, 0, 0, 0)),
                         pl.BlockSpec((Cout, 1), lambda i: (0, 0))]

    out_shape = jax.ShapeDtypeStruct((L_f, C_f, N_pad), jnp.float32)
    out_spec = pl.BlockSpec((L_f, C_f, TB), lambda i: (0, 0, i))

    # VMEM scratch: batch-on-lanes s2d buffers for layer-1..n-1 inputs.
    scratch_shapes = [pltpu.VMEM((layer_dims[l][4], s * layer_dims[l][0], TB), jnp.float32)
                      for l in range(1, n_layers)]

    kernel = _make_fused_head_kernel(layer_dims, use_mxu, s, pad, K, TB, mxu_bf16)

    # Real (unpadded-compute, padded-batch) cost hint for the XLA scheduler.
    flops = int(sum(2 * N_pad * L_out * Cout * Cin * K
                    for (Cin, Cout, _, L_out, _) in layer_dims))
    wgt_bytes = int(sum(4 * (w.size + b.size) for (w, b) in params))
    bytes_accessed = int(4 * (R0 * s * C0 + L_f * C_f) * N_pad + wgt_bytes)
    cost = pl.CostEstimate(flops=flops, transcendentals=0, bytes_accessed=bytes_accessed)

    need = _vmem_need(TB)
    vmem_limit = int(max(need, min(vmem_budget + (16 << 20), max(need, 16 << 20))))

    out = pl.pallas_call(
        kernel,
        out_shape=out_shape,
        grid=grid,
        in_specs=in_specs,
        out_specs=out_spec,
        scratch_shapes=scratch_shapes,
        compiler_params=pltpu.CompilerParams(
            dimension_semantics=("parallel",),
            vmem_limit_bytes=vmem_limit),
        cost_estimate=cost,
    )(*flat_inputs)

    # Single layout conversion back to PyTorch NCL at the module boundary.
    return out[:, :, :N].transpose(2, 1, 0)                          # (N, C_f, L_f)


# --------------------------------------------------------------------------- #
# Head module (parameter setup mirrors the PyTorch __init__)
# --------------------------------------------------------------------------- #
class HeadPallas:
    def __init__(self, input_size, n_classes, time_window, n_steps, kernel_size, key):
        self.stride = math.ceil((input_size / n_classes) ** (1.0 / n_steps))
        self.pad = (kernel_size - self.stride) // 2
        self.kernel_size = kernel_size
        if self.pad < 0:
            raise ValueError("stride > kernel_size gives negative padding "
                             "(PyTorch rejects this too)")

        channels_steps = np.linspace(1, time_window, n_steps + 1, dtype=int)
        self.params = []
        for cin, cout in zip(channels_steps[:-1], channels_steps[1:]):
            cin, cout = int(cin), int(cout)
            key, k_w, k_b = jax.random.split(key, 3)
            fan_in = cin * kernel_size
            bound = 1.0 / math.sqrt(fan_in)          # PyTorch Conv1d default init range
            w = jax.random.uniform(k_w, (cout, cin, kernel_size), jnp.float32, -bound, bound)
            b = jax.random.uniform(k_b, (cout,), jnp.float32, -bound, bound)
            self.params.append((w, b))

    def __call__(self, x):
        return head_forward_pallas(x, self.params, self.stride, self.pad)


# Pure-JAX reference (same semantics as the PyTorch nn.Sequential) for sanity check.
def _ref_forward(x, params, stride, pad):
    for w, b in params:
        x = jax.lax.conv_general_dilated(
            x, w, window_strides=(stride,), padding=[(pad, pad)],
            dimension_numbers=("NCH", "OIH", "NCH"))
        x = jnp.maximum(x + b[None, :, None], 0.0)
    return x


if __name__ == "__main__":
    key = jax.random.PRNGKey(0)

    # Small configs exercising: no-pad / padded halos, stride 2 and 3, the bulk
    # (Cout % 8 == 0) and per-row scatter writebacks, and 1/2 scratch buffers.
    cases = [
        dict(input_size=16, n_classes=4, time_window=8,  n_steps=2, kernel_size=3, batch=2),
        dict(input_size=16, n_classes=4, time_window=16, n_steps=2, kernel_size=5, batch=3),
        dict(input_size=64, n_classes=4, time_window=12, n_steps=3, kernel_size=5, batch=5),
    ]

    for cfg in cases:
        key, k_x, k_h = jax.random.split(key, 3)
        x = jax.random.normal(k_x, (cfg["batch"], 1, cfg["input_size"]), dtype=jnp.float32)

        head = HeadPallas(cfg["input_size"], cfg["n_classes"], cfg["time_window"],
                          cfg["n_steps"], cfg["kernel_size"], k_h)

        y = jax.block_until_ready(head(x))
        y_ref = jax.block_until_ready(_ref_forward(x, head.params, head.stride, head.pad))

        assert y.shape == y_ref.shape, (y.shape, y_ref.shape)
        np.testing.assert_allclose(np.asarray(y), np.asarray(y_ref), rtol=3e-5, atol=3e-5)

        expected_cout = int(np.linspace(1, cfg["time_window"],
                                        cfg["n_steps"] + 1, dtype=int)[-1])
        assert y.shape[0] == cfg["batch"] and y.shape[1] == expected_cout

    print("KERNEL_OK")
</pallas_src>

<mosaic_0001>
module attributes {stable_mosaic.version = 11 : i64} {
  func.func @kernel(%arg0: i32, %arg1: memref<8x2x8xf32, #tpu.memory_space<vmem>>, %arg2: memref<3x1x4x1xf32, #tpu.memory_space<vmem>>, %arg3: memref<4x1xf32, #tpu.memory_space<vmem>>, %arg4: memref<3x4x8x1xf32, #tpu.memory_space<vmem>>, %arg5: memref<8x1xf32, #tpu.memory_space<vmem>>, %arg6: memref<3x8x8xf32, #tpu.memory_space<vmem>>, %arg7: memref<4x8x8xf32, #tpu.memory_space<vmem>>) attributes {dimension_semantics = [#tpu.dimension_semantics<parallel>], iteration_bounds = array<i64: 1>, scalar_prefetch = 0 : i64, scratch_operands = 1 : i64, tpu.core_type = #tpu.core_type<tc>, window_params = [{transform_indices = @transform_0, window_bounds = array<i64: 8, 2, 8>}, {pipeline_mode = #tpu.pipeline_mode<synchronous>, transform_indices = @transform_1, window_bounds = array<i64: 3, 1, 4, 1>}, {pipeline_mode = #tpu.pipeline_mode<synchronous>, transform_indices = @transform_2, window_bounds = array<i64: 4, 1>}, {pipeline_mode = #tpu.pipeline_mode<synchronous>, transform_indices = @transform_3, window_bounds = array<i64: 3, 4, 8, 1>}, {pipeline_mode = #tpu.pipeline_mode<synchronous>, transform_indices = @transform_4, window_bounds = array<i64: 8, 1>}, {transform_indices = @transform_5, window_bounds = array<i64: 3, 8, 8>}]} {
    %cst = arith.constant 0.000000e+00 : f32
    %0 = vector.broadcast %cst : f32 to vector<7x4x8xf32>
    %c0 = arith.constant 0 : index
    %c0_0 = arith.constant 0 : index
    %c0_1 = arith.constant 0 : index
    %1 = vector.load %arg1[%c0, %c0_0, %c0_1] : memref<8x2x8xf32, #tpu.memory_space<vmem>>, vector<7x1x8xf32>
    %c0_2 = arith.constant 0 : index
    %c0_3 = arith.constant 0 : index
    %c0_4 = arith.constant 0 : index
    %c0_5 = arith.constant 0 : index
    %2 = vector.load %arg2[%c0_2, %c0_3, %c0_4, %c0_5] : memref<3x1x4x1xf32, #tpu.memory_space<vmem>>, vector<1x1x4x1xf32>
    %3 = vector.shape_cast %2 : vector<1x1x4x1xf32> to vector<1x4x1xf32>
    %4 = vector.broadcast %1 : vector<7x1x8xf32> to vector<7x4x8xf32>
    %5 = vector.broadcast %3 : vector<1x4x1xf32> to vector<7x4x8xf32>
    %6 = arith.mulf %4, %5 : vector<7x4x8xf32>
    %7 = arith.addf %0, %6 : vector<7x4x8xf32>
    %c0_6 = arith.constant 0 : index
    %c1 = arith.constant 1 : index
    %c0_7 = arith.constant 0 : index
    %8 = vector.load %arg1[%c0_6, %c1, %c0_7] : memref<8x2x8xf32, #tpu.memory_space<vmem>>, vector<7x1x8xf32>
    %c1_8 = arith.constant 1 : index
    %c0_9 = arith.constant 0 : index
    %c0_10 = arith.constant 0 : index
    %c0_11 = arith.constant 0 : index
    %9 = vector.load %arg2[%c1_8, %c0_9, %c0_10, %c0_11] : memref<3x1x4x1xf32, #tpu.memory_space<vmem>>, vector<1x1x4x1xf32>
    %10 = vector.shape_cast %9 : vector<1x1x4x1xf32> to vector<1x4x1xf32>
    %11 = vector.broadcast %8 : vector<7x1x8xf32> to vector<7x4x8xf32>
    %12 = vector.broadcast %10 : vector<1x4x1xf32> to vector<7x4x8xf32>
    %13 = arith.mulf %11, %12 : vector<7x4x8xf32>
    %14 = arith.addf %7, %13 : vector<7x4x8xf32>
    %c1_12 = arith.constant 1 : index
    %c0_13 = arith.constant 0 : index
    %c0_14 = arith.constant 0 : index
    %15 = vector.load %arg1[%c1_12, %c0_13, %c0_14] : memref<8x2x8xf32, #tpu.memory_space<vmem>>, vector<7x1x8xf32>
    %c2 = arith.constant 2 : index
    %c0_15 = arith.constant 0 : index
    %c0_16 = arith.constant 0 : index
    %c0_17 = arith.constant 0 : index
    %16 = vector.load %arg2[%c2, %c0_15, %c0_16, %c0_17] : memref<3x1x4x1xf32, #tpu.memory_space<vmem>>, vector<1x1x4x1xf32>
    %17 = vector.shape_cast %16 : vector<1x1x4x1xf32> to vector<1x4x1xf32>
    %18 = vector.broadcast %15 : vector<7x1x8xf32> to vector<7x4x8xf32>
    %19 = vector.broadcast %17 : vector<1x4x1xf32> to vector<7x4x8xf32>
    %20 = arith.mulf %18, %19 : vector<7x4x8xf32>
    %21 = arith.addf %14, %20 : vector<7x4x8xf32>
    %c0_18 = arith.constant 0 : index
    %c0_19 = arith.constant 0 : index
    %22 = vector.load %arg3[%c0_18, %c0_19] : memref<4x1xf32, #tpu.memory_space<vmem>>, vector<4x1xf32>
    %23 = vector.shape_cast %22 : vector<4x1xf32> to vector<1x4x1xf32>
    %24 = vector.broadcast %23 : vector<1x4x1xf32> to vector<7x4x8xf32>
    %25 = arith.addf %21, %24 : vector<7x4x8xf32>
    %cst_20 = arith.constant 0.000000e+00 : f32
    %26 = vector.broadcast %cst_20 : f32 to vector<7x4x8xf32>
    %27 = arith.maximumf %25, %26 : vector<7x4x8xf32>
    %28 = vector.extract_strided_slice %27 {offsets = [0, 0, 0], sizes = [1, 4, 8], strides = [1, 1, 1]} : vector<7x4x8xf32> to vector<1x4x8xf32>
    %29 = vector.shape_cast %28 : vector<1x4x8xf32> to vector<4x8xf32>
    %c0_21 = arith.constant 0 : index
    %c0_22 = arith.constant 0 : index
    %c0_23 = arith.constant 0 : index
    %30 = vector.load %arg7[%c0_21, %c0_22, %c0_23] : memref<4x8x8xf32, #tpu.memory_space<vmem>>, vector<1x4x8xf32>
    %31 = vector.shape_cast %30 : vector<1x4x8xf32> to vector<4x8xf32>
    %32 = vector.shape_cast %29 : vector<4x8xf32> to vector<1x4x8xf32>
    tpu.vector_store %arg7[%c0_21, %c0_22, %c0_23], %32 {strides = array<i32>} : memref<4x8x8xf32, #tpu.memory_space<vmem>>, vector<1x4x8xf32>,
    %33 = vector.extract_strided_slice %27 {offsets = [1, 0, 0], sizes = [1, 4, 8], strides = [1, 1, 1]} : vector<7x4x8xf32> to vector<1x4x8xf32>
    %34 = vector.shape_cast %33 : vector<1x4x8xf32> to vector<4x8xf32>
    %c0_24 = arith.constant 0 : index
    %c4 = arith.constant 4 : index
    %c0_25 = arith.constant 0 : index
    %35 = vector.load %arg7[%c0_24, %c4, %c0_25] : memref<4x8x8xf32, #tpu.memory_space<vmem>>, vector<1x4x8xf32>
    %36 = vector.shape_cast %35 : vector<1x4x8xf32> to vector<4x8xf32>
    %37 = vector.shape_cast %34 : vector<4x8xf32> to vector<1x4x8xf32>
    tpu.vector_store %arg7[%c0_24, %c4, %c0_25], %37 {strides = array<i32>} : memref<4x8x8xf32, #tpu.memory_space<vmem>>, vector<1x4x8xf32>,
    %38 = vector.extract_strided_slice %27 {offsets = [2, 0, 0], sizes = [1, 4, 8], strides = [1, 1, 1]} : vector<7x4x8xf32> to vector<1x4x8xf32>
    %39 = vector.shape_cast %38 : vector<1x4x8xf32> to vector<4x8xf32>
    %c1_26 = arith.constant 1 : index
    %c0_27 = arith.constant 0 : index
    %c0_28 = arith.constant 0 : index
    %40 = vector.load %arg7[%c1_26, %c0_27, %c0_28] : memref<4x8x8xf32, #tpu.memory_space<vmem>>, vector<1x4x8xf32>
    %41 = vector.shape_cast %40 : vector<1x4x8xf32> to vector<4x8xf32>
    %42 = vector.shape_cast %39 : vector<4x8xf32> to vector<1x4x8xf32>
    tpu.vector_store %arg7[%c1_26, %c0_27, %c0_28], %42 {strides = array<i32>} : memref<4x8x8xf32, #tpu.memory_space<vmem>>, vector<1x4x8xf32>,
    %43 = vector.extract_strided_slice %27 {offsets = [3, 0, 0], sizes = [1, 4, 8], strides = [1, 1, 1]} : vector<7x4x8xf32> to vector<1x4x8xf32>
    %44 = vector.shape_cast %43 : vector<1x4x8xf32> to vector<4x8xf32>
    %c1_29 = arith.constant 1 : index
    %c4_30 = arith.constant 4 : index
    %c0_31 = arith.constant 0 : index
    %45 = vector.load %arg7[%c1_29, %c4_30, %c0_31] : memref<4x8x8xf32, #tpu.memory_space<vmem>>, vector<1x4x8xf32>
    %46 = vector.shape_cast %45 : vector<1x4x8xf32> to vector<4x8xf32>
    %47 = vector.shape_cast %44 : vector<4x8xf32> to vector<1x4x8xf32>
    tpu.vector_store %arg7[%c1_29, %c4_30, %c0_31], %47 {strides = array<i32>} : memref<4x8x8xf32, #tpu.memory_space<vmem>>, vector<1x4x8xf32>,
    %48 = vector.extract_strided_slice %27 {offsets = [4, 0, 0], sizes = [1, 4, 8], strides = [1, 1, 1]} : vector<7x4x8xf32> to vector<1x4x8xf32>
    %49 = vector.shape_cast %48 : vector<1x4x8xf32> to vector<4x8xf32>
    %c2_32 = arith.constant 2 : index
    %c0_33 = arith.constant 0 : index
    %c0_34 = arith.constant 0 : index
    %50 = vector.load %arg7[%c2_32, %c0_33, %c0_34] : memref<4x8x8xf32, #tpu.memory_space<vmem>>, vector<1x4x8xf32>
    %51 = vector.shape_cast %50 : vector<1x4x8xf32> to vector<4x8xf32>
    %52 = vector.shape_cast %49 : vector<4x8xf32> to vector<1x4x8xf32>
    tpu.vector_store %arg7[%c2_32, %c0_33, %c0_34], %52 {strides = array<i32>} : memref<4x8x8xf32, #tpu.memory_space<vmem>>, vector<1x4x8xf32>,
    %53 = vector.extract_strided_slice %27 {offsets = [5, 0, 0], sizes = [1, 4, 8], strides = [1, 1, 1]} : vector<7x4x8xf32> to vector<1x4x8xf32>
    %54 = vector.shape_cast %53 : vector<1x4x8xf32> to vector<4x8xf32>
    %c2_35 = arith.constant 2 : index
    %c4_36 = arith.constant 4 : index
    %c0_37 = arith.constant 0 : index
    %55 = vector.load %arg7[%c2_35, %c4_36, %c0_37] : memref<4x8x8xf32, #tpu.memory_space<vmem>>, vector<1x4x8xf32>
    %56 = vector.shape_cast %55 : vector<1x4x8xf32> to vector<4x8xf32>
    %57 = vector.shape_cast %54 : vector<4x8xf32> to vector<1x4x8xf32>
    tpu.vector_store %arg7[%c2_35, %c4_36, %c0_37], %57 {strides = array<i32>} : memref<4x8x8xf32, #tpu.memory_space<vmem>>, vector<1x4x8xf32>,
    %58 = vector.extract_strided_slice %27 {offsets = [6, 0, 0], sizes = [1, 4, 8], strides = [1, 1, 1]} : vector<7x4x8xf32> to vector<1x4x8xf32>
    %59 = vector.shape_cast %58 : vector<1x4x8xf32> to vector<4x8xf32>
    %c3 = arith.constant 3 : index
    %c0_38 = arith.constant 0 : index
    %c0_39 = arith.constant 0 : index
    %60 = vector.load %arg7[%c3, %c0_38, %c0_39] : memref<4x8x8xf32, #tpu.memory_space<vmem>>, vector<1x4x8xf32>
    %61 = vector.shape_cast %60 : vector<1x4x8xf32> to vector<4x8xf32>
    %62 = vector.shape_cast %59 : vector<4x8xf32> to vector<1x4x8xf32>
    tpu.vector_store %arg7[%c3, %c0_38, %c0_39], %62 {strides = array<i32>} : memref<4x8x8xf32, #tpu.memory_space<vmem>>, vector<1x4x8xf32>,
    %cst_40 = arith.constant 0.000000e+00 : f32
    %63 = vector.broadcast %cst_40 : f32 to vector<3x8x8xf32>
    %c0_41 = arith.constant 0 : index
    %c0_42 = arith.constant 0 : index
    %c0_43 = arith.constant 0 : index
    %64 = vector.load %arg7[%c0_41, %c0_42, %c0_43] : memref<4x8x8xf32, #tpu.memory_space<vmem>>, vector<3x1x8xf32>
    %c0_44 = arith.constant 0 : index
    %c0_45 = arith.constant 0 : index
    %c0_46 = arith.constant 0 : index
    %c0_47 = arith.constant 0 : index
    %65 = vector.load %arg4[%c0_44, %c0_45, %c0_46, %c0_47] : memref<3x4x8x1xf32, #tpu.memory_space<vmem>>, vector<1x1x8x1xf32>
    %66 = vector.shape_cast %65 : vector<1x1x8x1xf32> to vector<1x8x1xf32>
    %67 = vector.broadcast %64 : vector<3x1x8xf32> to vector<3x8x8xf32>
    %68 = vector.broadcast %66 : vector<1x8x1xf32> to vector<3x8x8xf32>
    %69 = arith.mulf %67, %68 : vector<3x8x8xf32>
    %70 = arith.addf %63, %69 : vector<3x8x8xf32>
    %c0_48 = arith.constant 0 : index
    %c1_49 = arith.constant 1 : index
    %c0_50 = arith.constant 0 : index
    %71 = vector.load %arg7[%c0_48, %c1_49, %c0_50] : memref<4x8x8xf32, #tpu.memory_space<vmem>>, vector<3x1x8xf32>
    %c0_51 = arith.constant 0 : index
    %c1_52 = arith.constant 1 : index
    %c0_53 = arith.constant 0 : index
    %c0_54 = arith.constant 0 : index
    %72 = vector.load %arg4[%c0_51, %c1_52, %c0_53, %c0_54] : memref<3x4x8x1xf32, #tpu.memory_space<vmem>>, vector<1x1x8x1xf32>
    %73 = vector.shape_cast %72 : vector<1x1x8x1xf32> to vector<1x8x1xf32>
    %74 = vector.broadcast %71 : vector<3x1x8xf32> to vector<3x8x8xf32>
    %75 = vector.broadcast %73 : vector<1x8x1xf32> to vector<3x8x8xf32>
    %76 = arith.mulf %74, %75 : vector<3x8x8xf32>
    %77 = arith.addf %70, %76 : vector<3x8x8xf32>
    %c0_55 = arith.constant 0 : index
    %c2_56 = arith.constant 2 : index
    %c0_57 = arith.constant 0 : index
    %78 = vector.load %arg7[%c0_55, %c2_56, %c0_57] : memref<4x8x8xf32, #tpu.memory_space<vmem>>, vector<3x1x8xf32>
    %c0_58 = arith.constant 0 : index
    %c2_59 = arith.constant 2 : index
    %c0_60 = arith.constant 0 : index
    %c0_61 = arith.constant 0 : index
    %79 = vector.load %arg4[%c0_58, %c2_59, %c0_60, %c0_61] : memref<3x4x8x1xf32, #tpu.memory_space<vmem>>, vector<1x1x8x1xf32>
    %80 = vector.shape_cast %79 : vector<1x1x8x1xf32> to vector<1x8x1xf32>
    %81 = vector.broadcast %78 : vector<3x1x8xf32> to vector<3x8x8xf32>
    %82 = vector.broadcast %80 : vector<1x8x1xf32> to vector<3x8x8xf32>
    %83 = arith.mulf %81, %82 : vector<3x8x8xf32>
    %84 = arith.addf %77, %83 : vector<3x8x8xf32>
    %c0_62 = arith.constant 0 : index
    %c3_63 = arith.constant 3 : index
    %c0_64 = arith.constant 0 : index
    %85 = vector.load %arg7[%c0_62, %c3_63, %c0_64] : memref<4x8x8xf32, #tpu.memory_space<vmem>>, vector<3x1x8xf32>
    %c0_65 = arith.constant 0 : index
    %c3_66 = arith.constant 3 : index
    %c0_67 = arith.constant 0 : index
    %c0_68 = arith.constant 0 : index
    %86 = vector.load %arg4[%c0_65, %c3_66, %c0_67, %c0_68] : memref<3x4x8x1xf32, #tpu.memory_space<vmem>>, vector<1x1x8x1xf32>
    %87 = vector.shape_cast %86 : vector<1x1x8x1xf32> to vector<1x8x1xf32>
    %88 = vector.broadcast %85 : vector<3x1x8xf32> to vector<3x8x8xf32>
    %89 = vector.broadcast %87 : vector<1x8x1xf32> to vector<3x8x8xf32>
    %90 = arith.mulf %88, %89 : vector<3x8x8xf32>
    %91 = arith.addf %84, %90 : vector<3x8x8xf32>
    %c0_69 = arith.constant 0 : index
    %c4_70 = arith.constant 4 : index
    %c0_71 = arith.constant 0 : index
    %92 = vector.load %arg7[%c0_69, %c4_70, %c0_71] : memref<4x8x8xf32, #tpu.memory_space<vmem>>, vector<3x1x8xf32>
    %c1_72 = arith.constant 1 : index
    %c0_73 = arith.constant 0 : index
    %c0_74 = arith.constant 0 : index
    %c0_75 = arith.constant 0 : index
    %93 = vector.load %arg4[%c1_72, %c0_73, %c0_74, %c0_75] : memref<3x4x8x1xf32, #tpu.memory_space<vmem>>, vector<1x1x8x1xf32>
    %94 = vector.shape_cast %93 : vector<1x1x8x1xf32> to vector<1x8x1xf32>
    %95 = vector.broadcast %92 : vector<3x1x8xf32> to vector<3x8x8xf32>
    %96 = vector.broadcast %94 : vector<1x8x1xf32> to vector<3x8x8xf32>
    %97 = arith.mulf %95, %96 : vector<3x8x8xf32>
    %98 = arith.addf %91, %97 : vector<3x8x8xf32>
    %c0_76 = arith.constant 0 : index
    %c5 = arith.constant 5 : index
    %c0_77 = arith.constant 0 : index
    %99 = vector.load %arg7[%c0_76, %c5, %c0_77] : memref<4x8x8xf32, #tpu.memory_space<vmem>>, vector<3x1x8xf32>
    %c1_78 = arith.constant 1 : index
    %c1_79 = arith.constant 1 : index
    %c0_80 = arith.constant 0 : index
    %c0_81 = arith.constant 0 : index
    %100 = vector.load %arg4[%c1_78, %c1_79, %c0_80, %c0_81] : memref<3x4x8x1xf32, #tpu.memory_space<vmem>>, vector<1x1x8x1xf32>
    %101 = vector.shape_cast %100 : vector<1x1x8x1xf32> to vector<1x8x1xf32>
    %102 = vector.broadcast %99 : vector<3x1x8xf32> to vector<3x8x8xf32>
    %103 = vector.broadcast %101 : vector<1x8x1xf32> to vector<3x8x8xf32>
    %104 = arith.mulf %102, %103 : vector<3x8x8xf32>
    %105 = arith.addf %98, %104 : vector<3x8x8xf32>
    %c0_82 = arith.constant 0 : index
    %c6 = arith.constant 6 : index
    %c0_83 = arith.constant 0 : index
    %106 = vector.load %arg7[%c0_82, %c6, %c0_83] : memref<4x8x8xf32, #tpu.memory_space<vmem>>, vector<3x1x8xf32>
    %c1_84 = arith.constant 1 : index
    %c2_85 = arith.constant 2 : index
    %c0_86 = arith.constant 0 : index
    %c0_87 = arith.constant 0 : index
    %107 = vector.load %arg4[%c1_84, %c2_85, %c0_86, %c0_87] : memref<3x4x8x1xf32, #tpu.memory_space<vmem>>, vector<1x1x8x1xf32>
    %108 = vector.shape_cast %107 : vector<1x1x8x1xf32> to vector<1x8x1xf32>
    %109 = vector.broadcast %106 : vector<3x1x8xf32> to vector<3x8x8xf32>
    %110 = vector.broadcast %108 : vector<1x8x1xf32> to vector<3x8x8xf32>
    %111 = arith.mulf %109, %110 : vector<3x8x8xf32>
    %112 = arith.addf %105, %111 : vector<3x8x8xf32>
    %c0_88 = arith.constant 0 : index
    %c7 = arith.constant 7 : index
    %c0_89 = arith.constant 0 : index
    %113 = vector.load %arg7[%c0_88, %c7, %c0_89] : memref<4x8x8xf32, #tpu.memory_space<vmem>>, vector<3x1x8xf32>
    %c1_90 = arith.constant 1 : index
    %c3_91 = arith.constant 3 : index
    %c0_92 = arith.constant 0 : index
    %c0_93 = arith.constant 0 : index
    %114 = vector.load %arg4[%c1_90, %c3_91, %c0_92, %c0_93] : memref<3x4x8x1xf32, #tpu.memory_space<vmem>>, vector<1x1x8x1xf32>
    %115 = vector.shape_cast %114 : vector<1x1x8x1xf32> to vector<1x8x1xf32>
    %116 = vector.broadcast %113 : vector<3x1x8xf32> to vector<3x8x8xf32>
    %117 = vector.broadcast %115 : vector<1x8x1xf32> to vector<3x8x8xf32>
    %118 = arith.mulf %116, %117 : vector<3x8x8xf32>
    %119 = arith.addf %112, %118 : vector<3x8x8xf32>
    %c1_94 = arith.constant 1 : index
    %c0_95 = arith.constant 0 : index
    %c0_96 = arith.constant 0 : index
    %120 = vector.load %arg7[%c1_94, %c0_95, %c0_96] : memref<4x8x8xf32, #tpu.memory_space<vmem>>, vector<3x1x8xf32>
    %c2_97 = arith.constant 2 : index
    %c0_98 = arith.constant 0 : index
    %c0_99 = arith.constant 0 : index
    %c0_100 = arith.constant 0 : index
    %121 = vector.load %arg4[%c2_97, %c0_98, %c0_99, %c0_100] : memref<3x4x8x1xf32, #tpu.memory_space<vmem>>, vector<1x1x8x1xf32>
    %122 = vector.shape_cast %121 : vector<1x1x8x1xf32> to vector<1x8x1xf32>
    %123 = vector.broadcast %120 : vector<3x1x8xf32> to vector<3x8x8xf32>
    %124 = vector.broadcast %122 : vector<1x8x1xf32> to vector<3x8x8xf32>
    %125 = arith.mulf %123, %124 : vector<3x8x8xf32>
    %126 = arith.addf %119, %125 : vector<3x8x8xf32>
    %c1_101 = arith.constant 1 : index
    %c1_102 = arith.constant 1 : index
    %c0_103 = arith.constant 0 : index
    %127 = vector.load %arg7[%c1_101, %c1_102, %c0_103] : memref<4x8x8xf32, #tpu.memory_space<vmem>>, vector<3x1x8xf32>
    %c2_104 = arith.constant 2 : index
    %c1_105 = arith.constant 1 : index
    %c0_106 = arith.constant 0 : index
    %c0_107 = arith.constant 0 : index
    %128 = vector.load %arg4[%c2_104, %c1_105, %c0_106, %c0_107] : memref<3x4x8x1xf32, #tpu.memory_space<vmem>>, vector<1x1x8x1xf32>
    %129 = vector.shape_cast %128 : vector<1x1x8x1xf32> to vector<1x8x1xf32>
    %130 = vector.broadcast %127 : vector<3x1x8xf32> to vector<3x8x8xf32>
    %131 = vector.broadcast %129 : vector<1x8x1xf32> to vector<3x8x8xf32>
    %132 = arith.mulf %130, %131 : vector<3x8x8xf32>
    %133 = arith.addf %126, %132 : vector<3x8x8xf32>
    %c1_108 = arith.constant 1 : index
    %c2_109 = arith.constant 2 : index
    %c0_110 = arith.constant 0 : index
    %134 = vector.load %arg7[%c1_108, %c2_109, %c0_110] : memref<4x8x8xf32, #tpu.memory_space<vmem>>, vector<3x1x8xf32>
    %c2_111 = arith.constant 2 : index
    %c2_112 = arith.constant 2 : index
    %c0_113 = arith.constant 0 : index
    %c0_114 = arith.constant 0 : index
    %135 = vector.load %arg4[%c2_111, %c2_112, %c0_113, %c0_114] : memref<3x4x8x1xf32, #tpu.memory_space<vmem>>, vector<1x1x8x1xf32>
    %136 = vector.shape_cast %135 : vector<1x1x8x1xf32> to vector<1x8x1xf32>
    %137 = vector.broadcast %134 : vector<3x1x8xf32> to vector<3x8x8xf32>
    %138 = vector.broadcast %136 : vector<1x8x1xf32> to vector<3x8x8xf32>
    %139 = arith.mulf %137, %138 : vector<3x8x8xf32>
    %140 = arith.addf %133, %139 : vector<3x8x8xf32>
    %c1_115 = arith.constant 1 : index
    %c3_116 = arith.constant 3 : index
    %c0_117 = arith.constant 0 : index
    %141 = vector.load %arg7[%c1_115, %c3_116, %c0_117] : memref<4x8x8xf32, #tpu.memory_space<vmem>>, vector<3x1x8xf32>
    %c2_118 = arith.constant 2 : index
    %c3_119 = arith.constant 3 : index
    %c0_120 = arith.constant 0 : index
    %c0_121 = arith.constant 0 : index
    %142 = vector.load %arg4[%c2_118, %c3_119, %c0_120, %c0_121] : memref<3x4x8x1xf32, #tpu.memory_space<vmem>>, vector<1x1x8x1xf32>
    %143 = vector.shape_cast %142 : vector<1x1x8x1xf32> to vector<1x8x1xf32>
    %144 = vector.broadcast %141 : vector<3x1x8xf32> to vector<3x8x8xf32>
    %145 = vector.broadcast %143 : vector<1x8x1xf32> to vector<3x8x8xf32>
    %146 = arith.mulf %144, %145 : vector<3x8x8xf32>
    %147 = arith.addf %140, %146 : vector<3x8x8xf32>
    %c0_122 = arith.constant 0 : index
    %c0_123 = arith.constant 0 : index
    %148 = vector.load %arg5[%c0_122, %c0_123] : memref<8x1xf32, #tpu.memory_space<vmem>>, vector<8x1xf32>
    %149 = vector.shape_cast %148 : vector<8x1xf32> to vector<1x8x1xf32>
    %150 = vector.broadcast %149 : vector<1x8x1xf32> to vector<3x8x8xf32>
    %151 = arith.addf %147, %150 : vector<3x8x8xf32>
    %cst_124 = arith.constant 0.000000e+00 : f32
    %152 = vector.broadcast %cst_124 : f32 to vector<3x8x8xf32>
    %153 = arith.maximumf %151, %152 : vector<3x8x8xf32>
    %c0_125 = arith.constant 0 : index
    %c0_126 = arith.constant 0 : index
    %c0_127 = arith.constant 0 : index
    %154 = vector.load %arg6[%c0_125, %c0_126, %c0_127] : memref<3x8x8xf32, #tpu.memory_space<vmem>>, vector<3x8x8xf32>
    tpu.vector_store %arg6[%c0_125, %c0_126, %c0_127], %153 {strides = array<i32>} : memref<3x8x8xf32, #tpu.memory_space<vmem>>, vector<3x8x8xf32>,
    return
  }
  func.func @transform_0(%arg0: i32) -> (i32, i32, i32) {
    %c0_i32 = arith.constant 0 : i32
    %c0_i32_0 = arith.constant 0 : i32
    %c0_i32_1 = arith.constant 0 : i32
    return %c0_i32, %c0_i32_0, %arg0 : i32, i32, i32
  }
  func.func @transform_1(%arg0: i32) -> (i32, i32, i32, i32) {
    %c0_i32 = arith.constant 0 : i32
    %c0_i32_0 = arith.constant 0 : i32
    %c0_i32_1 = arith.constant 0 : i32
    %c0_i32_2 = arith.constant 0 : i32
    %c0_i32_3 = arith.constant 0 : i32
    return %c0_i32, %c0_i32_0, %c0_i32_1, %c0_i32_2 : i32, i32, i32, i32
  }
  func.func @transform_2(%arg0: i32) -> (i32, i32) {
    %c0_i32 = arith.constant 0 : i32
    %c0_i32_0 = arith.constant 0 : i32
    %c0_i32_1 = arith.constant 0 : i32
    return %c0_i32, %c0_i32_0 : i32, i32
  }
  func.func @transform_3(%arg0: i32) -> (i32, i32, i32, i32) {
    %c0_i32 = arith.constant 0 : i32
    %c0_i32_0 = arith.constant 0 : i32
    %c0_i32_1 = arith.constant 0 : i32
    %c0_i32_2 = arith.constant 0 : i32
    %c0_i32_3 = arith.constant 0 : i32
    return %c0_i32, %c0_i32_0, %c0_i32_1, %c0_i32_2 : i32, i32, i32, i32
  }
  func.func @transform_4(%arg0: i32) -> (i32, i32) {
    %c0_i32 = arith.constant 0 : i32
    %c0_i32_0 = arith.constant 0 : i32
    %c0_i32_1 = arith.constant 0 : i32
    return %c0_i32, %c0_i32_0 : i32, i32
  }
  func.func @transform_5(%arg0: i32) -> (i32, i32, i32) {
    %c0_i32 = arith.constant 0 : i32
    %c0_i32_0 = arith.constant 0 : i32
    %c0_i32_1 = arith.constant 0 : i32
    return %c0_i32, %c0_i32_0, %arg0 : i32, i32, i32
  }
}

</mosaic_0001>

<bundles_post_ra>
// kernel: tpu_custom_call.1
= control target key start
LH: loop header
LB: loop body
LE: loop exit
PB: predicated region body
PF: predicated region fallthrough
CT: control target
= control target key end

     0   :  { %v694_v2 = vmov 0   ;;  %s875_s0 = inlined_call_operand.vmem [shape: f32[8,2,8], index: 0, kind: input, shape index: {}]   ;;  %s876_s1 = inlined_call_operand.vmem [shape: f32[3,1,4,1], index: 1, kind: input, shape index: {}]   ;;  %s877_s2 = inlined_call_operand.vmem [shape: f32[4,1], index: 2, kind: input, shape index: {}]   ;;  %s878_s3 = inlined_call_operand.vmem [shape: f32[3,4,8,1], index: 3, kind: input, shape index: {}]   ;;  %s879_s4 = inlined_call_operand.vmem [shape: f32[8,1], index: 4, kind: input, shape index: {}]   ;;  %s880_s5 = inlined_call_operand.hbm [shape: f32[3,8,8], index: 5, kind: output, shape index: {}]  }
   0x1   :  { %v609_v0 = vld [vmem:[%s876_s1 + $0x8] sm:$0xf]  ;;  %v28_v1 = vld [vmem:[%s876_s1] sm:$0xf]  ;;  %669 = vset.pattern.permute.xlu1 %v694_v2  ;;  %668 = vset.pattern.permute.xlu0 %v694_v2  ;;  %v594_v4 = vld [vmem:[%s876_s1 + $0x4] sm:$0xf] }
   0x2   :  { %172 = vperm.xlu1 %669, %v609_v0   ;;  %59 = vperm.xlu0 %668, %v28_v1   ;;  %v189_v3 = vld [vmem:[%s877_s2] sm:$0xf]  ;;  %v620_v5 = vld [vmem:[%s878_s3 + $0x8] sm:$0xff] }
   0x3   :  { %v223_v6 = vld [vmem:[%s878_s3] sm:$0xff] }
   0x6   :  { %192 = vperm.xlu1 %669, %v189_v3   ;;  %115 = vperm.xlu0 %668, %v594_v4  }
   0xa   :  { %266 = vperm.xlu1 %669, %v620_v5   ;;  %238 = vperm.xlu0 %668, %v223_v6  }
   0xb   :  { %10 = vsyncpa [#allocation4], 0  ;;  %v628_v7 = vld [vmem:[%s878_s3 + $0x18] sm:$0xff]  ;;  %v624_v8 = vld [vmem:[%s878_s3 + $0x10] sm:$0xff]  ;;  %vm209_vm0 = vcmask 60416   ;;  %vm567_vm1 = vcmask 64512  }
   0xc   :  { %v636_v9 = vld [vmem:[%s878_s3 + $0x28] sm:$0xff]  ;;  %v632_v10 = vld [vmem:[%s878_s3 + $0x20] sm:$0xff]  ;;  %v644_v11 = vld [vmem:[%s878_s3 + $0x38] sm:$0xff] }
   0xd   :  { %v640_v12 = vld [vmem:[%s878_s3 + $0x30] sm:$0xff]  ;;  %v652_v13 = vld [vmem:[%s878_s3 + $0x48] sm:$0xff]  ;;  %v648_v14 = vld [vmem:[%s878_s3 + $0x40] sm:$0xff] }
   0xe   :  { %322 = vperm.xlu1 %669, %v628_v7   ;;  %294 = vperm.xlu0 %668, %v624_v8   ;;  %v660_v15 = vld [vmem:[%s878_s3 + $0x58] sm:$0xff]  ;;  %v656_v16 = vld [vmem:[%s878_s3 + $0x50] sm:$0xff]  ;;  %v555_v17 = vld [vmem:[%s879_s4] sm:$0xff] }
   0xf   :  { %v610_v18 = vld [vmem:[%s875_s0 + $0x2] ss:$0 sm:$0xff]  ;;  %v611_v19 = vld [vmem:[%s875_s0 + $0x4] ss:$0 sm:$0xff]  ;;  %v612_v20 = vld [vmem:[%s875_s0 + $0x6] ss:$0 sm:$0xff] }
  0x10   :  { %v613_v21 = vld [vmem:[%s875_s0 + $0x8] ss:$0 sm:$0xff]  ;;  %v616_v22 = vld [vmem:[%s875_s0 + $0xe] ss:$0 sm:$0xff]  ;;  %v587_v25 = vld [vmem:[%s875_s0] ss:$0 sm:$0xff] }
  0x11   :  { %v614_v26 = vld [vmem:[%s875_s0 + $0xa] ss:$0 sm:$0xff]  ;;  %v615_v27 = vld [vmem:[%s875_s0 + $0xc] ss:$0 sm:$0xff]  ;;  %v595_v29 = vld [vmem:[%s875_s0 + $0x1] ss:$0 sm:$0xff] }
  0x12   :  { %378 = vperm.xlu1 %669, %v636_v9   ;;  %350 = vperm.xlu0 %668, %v632_v10   ;;  %v596_v34 = vld [vmem:[%s875_s0 + $0x3] ss:$0 sm:$0xff]  ;;  %v597_v35 = vld [vmem:[%s875_s0 + $0x5] ss:$0 sm:$0xff]  ;;  %v598_v36 = vld [vmem:[%s875_s0 + $0x7] ss:$0 sm:$0xff] }
  0x13   :  { %v599_v41 = vld [vmem:[%s875_s0 + $0x9] ss:$0 sm:$0xff]  ;;  %v600_v42 = vld [vmem:[%s875_s0 + $0xb] ss:$0 sm:$0xff]  ;;  %v601_v43 = vld [vmem:[%s875_s0 + $0xd] ss:$0 sm:$0xff] }
  0x14   :  { %s695_s0 = smov [#allocation3]  }
  0x15   :  { %s576_s26 = sshll.u32 %s695_s0, 4  ;;  %s577_s26 = int_to_ptr.vmem [resolvable:$true] %s576_s26 }
  0x16   :  { %434 = vperm.xlu1 %669, %v644_v11   ;;  %406 = vperm.xlu0 %668, %v640_v12   ;;  %s670_s27 = scalar_lea.vmem %s577_s26, 384  ;;  %p675_p1 = scmp.lt.s32.totalorder %s577_s26, %s577_s26 }
  0x17   :  { %p671_p0 = scmp.ne.s32.totalorder %s577_s26, %s670_s27  ;;  %p676_p2 = scmp.lt.s32.totalorder %s670_s27, %s670_s27 }
  0x19   :  { %p677_p3 = por %p676_p2, %p675_p1 }
  0x1a   :  { %490 = vperm.xlu1 %669, %v652_v13   ;;  %462 = vperm.xlu0 %668, %v648_v14  }
  0x1b   :  { %p678_p4 = pnand %p677_p3, %p671_p0 }
  0x1e   :  { %546 = vperm.xlu1 %669, %v660_v15   ;;  %518 = vperm.xlu0 %668, %v656_v16  }
  0x22   :  { %558 = vperm.xlu0 %668, %v555_v17  }
  0x81   :  { %v173_v23 = vpop.permute.xlu1 %172  ;;  %v60_v24 = vpop.permute.xlu0 %59 }
  0x82   :  { %v175_v28 = vmul.f32 %v610_v18, %v173_v23  ;;  %v176_v30 = vmul.f32 %v611_v19, %v173_v23  ;;  %v177_v31 = vmul.f32 %v612_v20, %v173_v23  ;;  %v178_v32 = vmul.f32 %v613_v21, %v173_v23 }
  0x83   :  { %v179_v33 = vmul.f32 %v614_v26, %v173_v23  ;;  %v180_v37 = vmul.f32 %v615_v27, %v173_v23  ;;  %v181_v38 = vmul.f32 %v616_v22, %v173_v23  ;;  %v62_v39 = vmul.f32 %v587_v25, %v60_v24 }
  0x84   :  { %v63_v40 = vmul.f32 %v610_v18, %v60_v24  ;;  %v64_v44 = vmul.f32 %v611_v19, %v60_v24  ;;  %v65_v45 = vmul.f32 %v612_v20, %v60_v24  ;;  %v66_v46 = vmul.f32 %v613_v21, %v60_v24 }
  0x85   :  { %v67_v47 = vmul.f32 %v614_v26, %v60_v24  ;;  %v116_v48 = vpop.permute.xlu0 %115  ;;  %v193_v49 = vpop.permute.xlu1 %192  ;;  %v68_v54 = vmul.f32 %v615_v27, %v60_v24 }
  0x86   :  { %v118_v50 = vmul.f32 %v595_v29, %v116_v48  ;;  %v119_v51 = vmul.f32 %v596_v34, %v116_v48  ;;  %v120_v52 = vmul.f32 %v597_v35, %v116_v48  ;;  %v121_v53 = vmul.f32 %v598_v36, %v116_v48 }
  0x87   :  { %v122_v55 = vmul.f32 %v599_v41, %v116_v48  ;;  %v123_v56 = vmul.f32 %v600_v42, %v116_v48  ;;  %v124_v57 = vmul.f32 %v601_v43, %v116_v48 }
  0x88   :  { %v125_v58 = vadd.f32 %v118_v50, %v62_v39  ;;  %v126_v59 = vadd.f32 %v119_v51, %v63_v40  ;;  %v127_v60 = vadd.f32 %v120_v52, %v64_v44  ;;  %v128_v61 = vadd.f32 %v121_v53, %v65_v45 }
  0x89   :  { %v129_v62 = vadd.f32 %v122_v55, %v66_v46  ;;  %v130_v63 = vadd.f32 %v123_v56, %v67_v47  ;;  %v131_v0 = vadd.f32 %v124_v57, %v68_v54  ;;  %v239_v5 = vpop.permute.xlu0 %238  ;;  %v267_v13 = vpop.permute.xlu1 %266 }
  0x8a   :  { %v182_v1 = vadd.f32 %v175_v28, %v125_v58  ;;  %v183_v2 = vadd.f32 %v176_v30, %v126_v59  ;;  %v184_v3 = vadd.f32 %v177_v31, %v127_v60  ;;  %v185_v4 = vadd.f32 %v178_v32, %v128_v61 }
  0x8b   :  { %v186_v6 = vadd.f32 %v179_v33, %v129_v62  ;;  %v187_v7 = vadd.f32 %v180_v37, %v130_v63  ;;  %v188_v8 = vadd.f32 %v181_v38, %v131_v0 }
  0x8c   :  { %v195_v9 = vadd.f32 %v193_v49, %v182_v1  ;;  %v196_v10 = vadd.f32 %v193_v49, %v183_v2  ;;  %v197_v11 = vadd.f32 %v193_v49, %v184_v3  ;;  %v198_v12 = vadd.f32 %v193_v49, %v185_v4 }
  0x8d   :  { %v199_v14 = vadd.f32 %v193_v49, %v186_v6  ;;  %v200_v15 = vadd.f32 %v193_v49, %v187_v7  ;;  %v201_v16 = vadd.f32 %v193_v49, %v188_v8  ;;  %v295_v24 = vpop.permute.xlu0 %294  ;;  %v323_v25 = vpop.permute.xlu1 %322 }
  0x8e   :  { %v202_v17 = vmax.f32 %v195_v9, 0.0  ;;  %v203_v18 = vmax.f32 %v196_v10, 0.0  ;;  %v204_v19 = vmax.f32 %v197_v11, 0.0  ;;  %v205_v20 = vmax.f32 %v198_v12, 0.0 }
  0x8f   :  { %v206_v21 = vmax.f32 %v199_v14, 0.0  ;;  %v207_v22 = vmax.f32 %v200_v15, 0.0  ;;  %v208_v23 = vmax.f32 %v201_v16, 0.0 }
  0x90   :  { %210 = vst.msk [vmem:[#allocation2] sm:$0xf] %vm209_vm0, %v202_v17  ;;  %211 = vst.msk [vmem:[#allocation2 + $0x4] sm:$0xf] %vm209_vm0, %v203_v18 }
  0x91   :  { %213 = vst.msk [vmem:[#allocation2 + $0x8] sm:$0xf] %vm209_vm0, %v204_v19  ;;  %214 = vst.msk [vmem:[#allocation2 + $0xc] sm:$0xf] %vm209_vm0, %v205_v20  ;;  %v351_v26 = vpop.permute.xlu0 %350  ;;  %v379_v36 = vpop.permute.xlu1 %378 }
  0x92   :  { %216 = vst.msk [vmem:[#allocation2 + $0x10] sm:$0xf] %vm209_vm0, %v206_v21  ;;  %217 = vst.msk [vmem:[#allocation2 + $0x14] sm:$0xf] %vm209_vm0, %v207_v22 }
  0x93   :  { %219 = vst.msk [vmem:[#allocation2 + $0x18] sm:$0xf] %vm209_vm0, %v208_v23 }
  0x95   :  { %v407_v54 = vpop.permute.xlu0 %406  ;;  %v435_v0 = vpop.permute.xlu1 %434 }
  0x97   :  { %v621_v27 = vld [vmem:[#allocation2 + $0x1] ss:$0 sm:$0xff]  ;;  %v617_v29 = vld [vmem:[#allocation2] ss:$0 sm:$0xff]  ;;  %v629_v40 = vld [vmem:[#allocation2 + $0x3] ss:$0 sm:$0xff] }
  0x98   :  { %v831_v28 = vld [vmem:[#allocation2 + $0x9] ss:$0 sm:$0xff]  ;;  %v269_v31 = vmul.f32 %v621_v27, %v267_v13  ;;  %v836_v33 = vld [vmem:[#allocation2 + $0x8] ss:$0 sm:$0xff]  ;;  %v241_v35 = vmul.f32 %v617_v29, %v239_v5  ;;  %v843_v41 = vld [vmem:[#allocation2 + $0xb] ss:$0 sm:$0xff]  ;;  %v325_v55 = vmul.f32 %v629_v40, %v323_v25 }
  0x99   :  { %v833_v30 = vld [vmem:[#allocation2 + $0x11] ss:$0 sm:$0xff]  ;;  %v270_v32 = vmul.f32 %v831_v28, %v267_v13  ;;  %v838_v34 = vld [vmem:[#allocation2 + $0x10] ss:$0 sm:$0xff]  ;;  %v242_v38 = vmul.f32 %v836_v33, %v239_v5  ;;  %v625_v43 = vld [vmem:[#allocation2 + $0x2] ss:$0 sm:$0xff]  ;;  %v326_v56 = vmul.f32 %v843_v41, %v323_v25  ;;  %v463_v19 = vpop.permute.xlu0 %462 }
  0x9a   :  { %v271_v37 = vmul.f32 %v833_v30, %v267_v13  ;;  %v243_v39 = vmul.f32 %v838_v34, %v239_v5  ;;  %v272_v42 = vadd.f32 %v269_v31, %v241_v35  ;;  %v845_v44 = vld [vmem:[#allocation2 + $0xa] ss:$0 sm:$0xff]  ;;  %v847_v45 = vld [vmem:[#allocation2 + $0x12] ss:$0 sm:$0xff]  ;;  %v849_v48 = vld [vmem:[#allocation2 + $0x13] ss:$0 sm:$0xff]  ;;  %v297_v49 = vmul.f32 %v625_v43, %v295_v24 }
  0x9b   :  { %v273_v46 = vadd.f32 %v270_v32, %v242_v38  ;;  %v298_v50 = vmul.f32 %v845_v44, %v295_v24  ;;  %v299_v51 = vmul.f32 %v847_v45, %v295_v24  ;;  %v633_v52 = vld [vmem:[#allocation2 + $0x4] ss:$0 sm:$0xff]  ;;  %v634_v53 = vld [vmem:[#allocation2 + $0xc] ss:$0 sm:$0xff]  ;;  %v635_v59 = vld [vmem:[#allocation2 + $0x14] ss:$0 sm:$0xff]  ;;  %v327_v60 = vmul.f32 %v849_v48, %v323_v25 }
  0x9c   :  { %v274_v47 = vadd.f32 %v271_v37, %v243_v39  ;;  %v300_v57 = vadd.f32 %v297_v49, %v272_v42  ;;  %v637_v62 = vld [vmem:[#allocation2 + $0x5] ss:$0 sm:$0xff]  ;;  %v638_v63 = vld [vmem:[#allocation2 + $0xd] ss:$0 sm:$0xff]  ;;  %v639_v1 = vld [vmem:[#allocation2 + $0x15] ss:$0 sm:$0xff]  ;;  %v353_v4 = vmul.f32 %v633_v52, %v351_v26  ;;  %v354_v5 = vmul.f32 %v634_v53, %v351_v26 }
  0x9d   :  { %v301_v58 = vadd.f32 %v298_v50, %v273_v46  ;;  %v355_v7 = vmul.f32 %v635_v59, %v351_v26  ;;  %v641_v8 = vld [vmem:[#allocation2 + $0x6] ss:$0 sm:$0xff]  ;;  %v642_v9 = vld [vmem:[#allocation2 + $0xe] ss:$0 sm:$0xff]  ;;  %v381_v10 = vmul.f32 %v637_v62, %v379_v36  ;;  %v382_v11 = vmul.f32 %v638_v63, %v379_v36  ;;  %v643_v14 = vld [vmem:[#allocation2 + $0x16] ss:$0 sm:$0xff]  ;;  %v491_v26 = vpop.permute.xlu1 %490  ;;  %v519_v49 = vpop.permute.xlu0 %518 }
  0x9e   :  { %v302_v61 = vadd.f32 %v299_v51, %v274_v47  ;;  %v328_v2 = vadd.f32 %v325_v55, %v300_v57  ;;  %v383_v15 = vmul.f32 %v639_v1, %v379_v36  ;;  %v645_v17 = vld [vmem:[#allocation2 + $0x7] ss:$0 sm:$0xff]  ;;  %v646_v18 = vld [vmem:[#allocation2 + $0xf] ss:$0 sm:$0xff]  ;;  %v647_v20 = vld [vmem:[#allocation2 + $0x17] ss:$0 sm:$0xff]  ;;  %v409_v23 = vmul.f32 %v641_v8, %v407_v54 }
  0x9f   :  { %v329_v3 = vadd.f32 %v326_v56, %v301_v58  ;;  %v410_v24 = vmul.f32 %v642_v9, %v407_v54  ;;  %v411_v27 = vmul.f32 %v643_v14, %v407_v54  ;;  %v437_v29 = vmul.f32 %v645_v17, %v435_v0  ;;  %v651_v40 = vld [vmem:[#allocation2 + $0x18] ss:$0 sm:$0xff]  ;;  %v655_v50 = vld [vmem:[#allocation2 + $0x19] ss:$0 sm:$0xff]  ;;  %v663_v63 = vld [vmem:[#allocation2 + $0x1b] ss:$0 sm:$0xff] }
  0xa0   :  { %v330_v6 = vadd.f32 %v327_v60, %v302_v61  ;;  %v356_v12 = vadd.f32 %v353_v4, %v328_v2  ;;  %v438_v31 = vmul.f32 %v646_v18, %v435_v0  ;;  %v439_v37 = vmul.f32 %v647_v20, %v435_v0  ;;  %v659_v60 = vld [vmem:[#allocation2 + $0x1a] ss:$0 sm:$0xff] }
  0xa1   :  { %v357_v13 = vadd.f32 %v354_v5, %v329_v3  ;;  %v465_v42 = vmul.f32 %v836_v33, %v463_v19  ;;  %v466_v43 = vmul.f32 %v838_v34, %v463_v19  ;;  %v467_v47 = vmul.f32 %v651_v40, %v463_v19  ;;  %v547_v57 = vpop.permute.xlu1 %546 }
  0xa2   :  { %v358_v16 = vadd.f32 %v355_v7, %v330_v6  ;;  %v384_v21 = vadd.f32 %v381_v10, %v356_v12  ;;  %v493_v51 = vmul.f32 %v831_v28, %v491_v26  ;;  %v494_v52 = vmul.f32 %v833_v30, %v491_v26  ;;  %v559_v6 = vpop.permute.xlu0 %558 }
  0xa3   :  { %v385_v22 = vadd.f32 %v382_v11, %v357_v13  ;;  %v495_v55 = vmul.f32 %v655_v50, %v491_v26  ;;  %v521_v33 = vmul.f32 %v845_v44, %v519_v49  ;;  %v522_v34 = vmul.f32 %v847_v45, %v519_v49 }
  0xa4   :  { %v386_v25 = vadd.f32 %v383_v15, %v358_v16  ;;  %v412_v32 = vadd.f32 %v409_v23, %v384_v21  ;;  %v523_v62 = vmul.f32 %v659_v60, %v519_v49  ;;  %v549_v0 = vmul.f32 %v843_v41, %v547_v57 }
  0xa5   :  { %v413_v35 = vadd.f32 %v410_v24, %v385_v22  ;;  %v550_v28 = vmul.f32 %v849_v48, %v547_v57  ;;  %v551_v2 = vmul.f32 %v663_v63, %v547_v57 }
  0xa6   :  { %v414_v38 = vadd.f32 %v411_v27, %v386_v25  ;;  %v440_v39 = vadd.f32 %v437_v29, %v412_v32 }
  0xa7   :  { %v441_v36 = vadd.f32 %v438_v31, %v413_v35 }
  0xa8   :  { %v442_v46 = vadd.f32 %v439_v37, %v414_v38  ;;  %v468_v53 = vadd.f32 %v465_v42, %v440_v39 }
  0xa9   :  { %v469_v54 = vadd.f32 %v466_v43, %v441_v36 }
  0xaa   :  { %v470_v56 = vadd.f32 %v467_v47, %v442_v46  ;;  %v496_v58 = vadd.f32 %v493_v51, %v468_v53 }
  0xab   :  { %v497_v59 = vadd.f32 %v494_v52, %v469_v54 }
  0xac   :  { %v498_v61 = vadd.f32 %v495_v55, %v470_v56  ;;  %v524_v30 = vadd.f32 %v521_v33, %v496_v58 }
  0xad   :  { %v525_v1 = vadd.f32 %v522_v34, %v497_v59 }
  0xae   :  { %v526_v3 = vadd.f32 %v523_v62, %v498_v61  ;;  %v552_v4 = vadd.f32 %v549_v0, %v524_v30 }
  0xaf   :  { %v553_v5 = vadd.f32 %v550_v28, %v525_v1 }
  0xb0   :  { %v554_v7 = vadd.f32 %v551_v2, %v526_v3  ;;  %v561_v8 = vadd.f32 %v559_v6, %v552_v4 }
  0xb1   :  { %v562_v9 = vadd.f32 %v559_v6, %v553_v5 }
  0xb2   :  { %v563_v44 = vadd.f32 %v559_v6, %v554_v7  ;;  %v564_v45 = vmax.f32 %v561_v8, 0.0 }
  0xb3   :  { %v565_v10 = vmax.f32 %v562_v9, 0.0 }
  0xb4   :  { %v566_v11 = vmax.f32 %v563_v44, 0.0  ;;  %568 = vst.msk [vmem:[#allocation3] sm:$0xff] %vm567_vm1, %v564_v45 }
  0xb5   :  { %569 = vst.msk [vmem:[#allocation3 + $0x8] sm:$0xff] %vm567_vm1, %v565_v10 }
  0xb6   :  { %570 = vst.msk [vmem:[#allocation3 + $0x10] sm:$0xff] %vm567_vm1, %v566_v11 }
  0xb7   :  { %681 = shalt.err (!%p678_p4)
}
  0xb8   :  { %s682_s30 = scalar_lea.hbm %s880_s5, 384 }
  0xb9   :  { %p683_p5 = scmp.ne.s32.totalorder %s880_s5, %s682_s30  ;;  %p686_p6 = scmp.lt.u32.totalorder %s682_s30, %s880_s5 }
  0xbb   :  { %p688_p7 = pnand %p686_p6, %p683_p5 }
  0xbd   :  { %691 = shalt.err (!%p688_p7)
}
  0xbe   :  { %s696_s4 = smov 128   ;;  %s697_s1 = smov 8  }
  0xbf   :  { %582 = dma.vmem_to_hbm [thread:$0]  %s577_s26, 384, %s880_s5, [#allocation4], %s696_s4, %s696_s4, %s697_s1  }
  0xc0   :  { %692 = dma.done.wait [#allocation4], 384  }
  0xc1   :  { %693 = vsyncadd [#allocation4], 4294966912 }
  0xc2   :  { %586 = vsyncpa [#allocation4], 1 }

</bundles_post_ra>
